<compile_context>
chip_gen: v7x
topology: tpu7x:2x2x1
jax: 0.10.0
libtpu: 0.0.40
codegen_flags: <defaults>
</compile_context>

<pallas_src>
import math

import jax
import jax.numpy as jnp
from jax.experimental import pallas as pl
from jax.experimental.pallas import tpu as pltpu

EPS = 1e-8  # eps in the PyTorch l2norm


def _round_up(x, m):
    return ((x + m - 1) // m) * m


# ----------------------------- Pallas kernel -------------------------------

def _linear_l2norm_kernel(x_ref, w_ref, b_ref, o_ref, acc_ref):
    """One (tm, Kp) output tile; grid axis 1 walks the D (reduction) axis."""
    k = pl.program_id(1)

    @pl.when(k == 0)
    def _():
        acc_ref[...] = jnp.zeros_like(acc_ref)

    # MXU matmul; inputs may be f32 or bf16, accumulation is always f32.
    acc_ref[...] += jnp.dot(
        x_ref[...], w_ref[...], preferred_element_type=jnp.float32
    )

    @pl.when(k == pl.num_programs(1) - 1)
    def _():
        y = acc_ref[...] + b_ref[...]
        # L2 norm along the feature (lane) axis.  Padded feature columns are
        # exactly zero (zero weight columns + zero bias), so the norm is exact.
        norm = jnp.sqrt(jnp.sum(y * y, axis=-1, keepdims=True)) + EPS
        o_ref[...] = (y / norm).astype(o_ref.dtype)


# ------------------------------ layer wrapper ------------------------------

def linear_l2norm(x2d, w, b, *, tm_max=256, tk_max=512,
                  vmem_limit_bytes=32 * 1024 * 1024):
    """Fused y = l2norm(x2d @ w + b, axis=-1).  x2d: (M, D), w: (D, K), b: (K,)."""
    M, D = x2d.shape
    Din, K = w.shape
    assert Din == D, "weight in_features must match activation feature dim"

    # Tile sizes: rows are tiled (pipelined, VMEM-bounded), the reduction axis
    # is tiled with an accumulator, and the output-feature axis stays whole
    # (the per-row norm needs the full row) but lane-dense (multiple of 128).
    tm = min(tm_max, _round_up(M, 8))
    tk = min(tk_max, _round_up(D, 128))
    Mp = _round_up(M, tm)
    Dp = _round_up(D, tk)
    Kp = _round_up(K, 128)

    xp = x2d if (Mp == M and Dp == D) else jnp.pad(x2d, ((0, Mp - M), (0, Dp - D)))
    wp = w if (Dp == D and Kp == K) else jnp.pad(w, ((0, Dp - D), (0, Kp - K)))
    bp = jnp.pad(b.astype(jnp.float32), (0, Kp - K)).reshape(1, Kp)

    grid = (Mp // tm, Dp // tk)

    cost = pl.CostEstimate(
        flops=2 * Mp * Dp * Kp,
        transcendentals=Mp,  # one sqrt per row
        bytes_accessed=(Mp * Dp * xp.dtype.itemsize
                        + Dp * Kp * wp.dtype.itemsize
                        + Mp * Kp * 4),
    )

    out = pl.pallas_call(
        _linear_l2norm_kernel,
        out_shape=jax.ShapeDtypeStruct((Mp, Kp), jnp.float32),
        grid_spec=pltpu.PrefetchScalarGridSpec(
            num_scalar_prefetch=0,
            grid=grid,
            in_specs=[
                pl.BlockSpec((tm, tk), lambda i, k: (i, k)),   # activation tile
                pl.BlockSpec((tk, Kp), lambda i, k: (k, 0)),   # weight tile
                pl.BlockSpec((1, Kp), lambda i, k: (0, 0)),    # bias (full)
            ],
            out_specs=pl.BlockSpec((tm, Kp), lambda i, k: (i, 0)),
            scratch_shapes=[pltpu.VMEM((tm, Kp), jnp.float32)],
        ),
        compiler_params=pltpu.CompilerParams(
            dimension_semantics=("parallel", "arbitrary"),
            vmem_limit_bytes=vmem_limit_bytes,
        ),
        cost_estimate=cost,
    )(xp, wp, bp)

    return out[:M, :K]


# ----------------------------- GridEncoder API -----------------------------

def init_grid_encoder_params(key, img_dim, embed_size):
    """Xavier-uniform weight (stored as (in, out)), zero bias — matches init_weights()."""
    r = math.sqrt(6.0) / math.sqrt(img_dim + embed_size)
    w = jax.random.uniform(key, (img_dim, embed_size), jnp.float32, -r, r)
    b = jnp.zeros((embed_size,), jnp.float32)
    return {"w": w, "b": b}


def grid_encoder_forward(params, img_grid, *, use_bf16_matmul=False):
    """img_grid: (..., img_dim) -> (..., embed_size), rows L2-normalized."""
    lead = img_grid.shape[:-1]
    D = img_grid.shape[-1]
    x2d = img_grid.reshape(-1, D)
    w, b = params["w"], params["b"]
    if use_bf16_matmul:
        # Halve HBM traffic / double MXU rate; accumulation & epilogue stay f32.
        x2d = x2d.astype(jnp.bfloat16)
        w = w.astype(jnp.bfloat16)
    out = linear_l2norm(x2d, w, b)
    return out.reshape(*lead, params["w"].shape[-1])


# ------------------------------ reference impl -----------------------------

def grid_encoder_reference(params, img_grid):
    y = img_grid @ params["w"] + params["b"]
    norm = jnp.sqrt(jnp.sum(y * y, axis=-1, keepdims=True)) + EPS
    return y / norm


# ---------------------------------- main ------------------------------------

if __name__ == "__main__":
    B, N = 2, 8                 # batch, grid cells
    img_dim, embed_size = 32, 64

    key = jax.random.PRNGKey(0)
    kx, kp = jax.random.split(key)
    img_grid = jax.random.normal(kx, (B, N, img_dim), jnp.float32)
    params = init_grid_encoder_params(kp, img_dim, embed_size)

    ref = grid_encoder_reference(params, img_grid)

    # f32 path (strict check).
    out = grid_encoder_forward(params, img_grid)
    out = jax.block_until_ready(out)
    assert out.shape == (B, N, embed_size)
    assert jnp.allclose(out, ref, atol=1e-4, rtol=1e-4), "f32 mismatch vs reference"

    # bf16-matmul path (perf feedback), looser tolerance.
    out_bf16 = grid_encoder_forward(params, img_grid, use_bf16_matmul=True)
    out_bf16 = jax.block_until_ready(out_bf16)
    assert jnp.allclose(out_bf16, ref, atol=3e-2, rtol=3e-2), "bf16 mismatch vs reference"

    print("KERNEL_OK")
</pallas_src>

<mosaic_0001>
module attributes {stable_mosaic.version = 11 : i64} {
  func.func @_linear_l2norm_kernel(%arg0: i32, %arg1: i32, %arg2: memref<16x128xf32, #tpu.memory_space<vmem>>, %arg3: memref<128x128xf32, #tpu.memory_space<vmem>>, %arg4: memref<1x128xf32, #tpu.memory_space<vmem>>, %arg5: memref<16x128xf32, #tpu.memory_space<vmem>>, %arg6: memref<16x128xf32, #tpu.memory_space<vmem>>) attributes {dimension_semantics = [#tpu.dimension_semantics<parallel>, #tpu.dimension_semantics<arbitrary>], iteration_bounds = array<i64: 1, 1>, scalar_prefetch = 0 : i64, scratch_operands = 1 : i64, tpu.core_type = #tpu.core_type<tc>, window_params = [{transform_indices = @transform_0, window_bounds = array<i64: 16, 128>}, {transform_indices = @transform_1, window_bounds = array<i64: 128, 128>}, {pipeline_mode = #tpu.pipeline_mode<synchronous>, transform_indices = @transform_2, window_bounds = array<i64: 1, 128>}, {transform_indices = @transform_3, window_bounds = array<i64: 16, 128>}]} {
    %c0_i32 = arith.constant 0 : i32
    %0 = arith.cmpi eq, %arg1, %c0_i32 : i32
    %1 = arith.extui %0 : i1 to i32
    %c0_i32_0 = arith.constant 0 : i32
    %2 = arith.cmpi ne, %1, %c0_i32_0 : i32
    scf.if %2 {
      %cst_10 = arith.constant 0.000000e+00 : f32
      %12 = vector.broadcast %cst_10 : f32 to vector<16x128xf32>
      %c0_11 = arith.constant 0 : index
      %c0_12 = arith.constant 0 : index
      %13 = vector.load %arg6[%c0_11, %c0_12] : memref<16x128xf32, #tpu.memory_space<vmem>>, vector<16x128xf32>
      tpu.vector_store %arg6[%c0_11, %c0_12], %12 {strides = array<i32>} : memref<16x128xf32, #tpu.memory_space<vmem>>, vector<16x128xf32>,
    } else {
    }
    %c0 = arith.constant 0 : index
    %c0_1 = arith.constant 0 : index
    %3 = vector.load %arg6[%c0, %c0_1] : memref<16x128xf32, #tpu.memory_space<vmem>>, vector<16x128xf32>
    %c0_2 = arith.constant 0 : index
    %c0_3 = arith.constant 0 : index
    %4 = vector.load %arg2[%c0_2, %c0_3] : memref<16x128xf32, #tpu.memory_space<vmem>>, vector<16x128xf32>
    %c0_4 = arith.constant 0 : index
    %c0_5 = arith.constant 0 : index
    %5 = vector.load %arg3[%c0_4, %c0_5] : memref<128x128xf32, #tpu.memory_space<vmem>>, vector<128x128xf32>
    %cst = arith.constant dense<0.000000e+00> : vector<16x128xf32>
    %6 = tpu.matmul %4, %5, %cst {dimension_numbers = #tpu.dot_dimension_numbers<[1], [0], [0], [1], [0, 0, 1, 1], [], []>} : vector<16x128xf32>, vector<128x128xf32>, vector<16x128xf32> -> vector<16x128xf32>
    %7 = arith.addf %3, %6 : vector<16x128xf32>
    %c0_6 = arith.constant 0 : index
    %c0_7 = arith.constant 0 : index
    %8 = vector.load %arg6[%c0_6, %c0_7] : memref<16x128xf32, #tpu.memory_space<vmem>>, vector<16x128xf32>
    tpu.vector_store %arg6[%c0_6, %c0_7], %7 {strides = array<i32>} : memref<16x128xf32, #tpu.memory_space<vmem>>, vector<16x128xf32>,
    %c0_i32_8 = arith.constant 0 : i32
    %9 = arith.cmpi eq, %arg1, %c0_i32_8 : i32
    %10 = arith.extui %9 : i1 to i32
    %c0_i32_9 = arith.constant 0 : i32
    %11 = arith.cmpi ne, %10, %c0_i32_9 : i32
    scf.if %11 {
      %c0_10 = arith.constant 0 : index
      %c0_11 = arith.constant 0 : index
      %12 = vector.load %arg6[%c0_10, %c0_11] : memref<16x128xf32, #tpu.memory_space<vmem>>, vector<16x128xf32>
      %c0_12 = arith.constant 0 : index
      %c0_13 = arith.constant 0 : index
      %13 = vector.load %arg4[%c0_12, %c0_13] : memref<1x128xf32, #tpu.memory_space<vmem>>, vector<1x128xf32>
      %14 = vector.broadcast %13 : vector<1x128xf32> to vector<16x128xf32>
      %15 = arith.addf %12, %14 : vector<16x128xf32>
      %16 = arith.mulf %15, %15 : vector<16x128xf32>
      %cst_14 = arith.constant dense<0.000000e+00> : vector<16xf32>
      %17 = vector.multi_reduction <add>, %16, %cst_14 [1] : vector<16x128xf32> to vector<16xf32>
      %18 = vector.shape_cast %17 : vector<16xf32> to vector<16x1xf32>
      %19 = math.sqrt %18 : vector<16x1xf32>
      %cst_15 = arith.constant 9.99999993E-9 : f32
      %20 = vector.broadcast %cst_15 : f32 to vector<16x1xf32>
      %21 = arith.addf %19, %20 : vector<16x1xf32>
      %22 = vector.broadcast %21 : vector<16x1xf32> to vector<16x128xf32>
      %23 = arith.divf %15, %22 : vector<16x128xf32>
      %c0_16 = arith.constant 0 : index
      %c0_17 = arith.constant 0 : index
      %24 = vector.load %arg5[%c0_16, %c0_17] : memref<16x128xf32, #tpu.memory_space<vmem>>, vector<16x128xf32>
      tpu.vector_store %arg5[%c0_16, %c0_17], %23 {strides = array<i32>} : memref<16x128xf32, #tpu.memory_space<vmem>>, vector<16x128xf32>,
    } else {
    }
    return
  }
  func.func @transform_0(%arg0: i32, %arg1: i32) -> (i32, i32) {
    %c0_i32 = arith.constant 0 : i32
    return %arg0, %arg1 : i32, i32
  }
  func.func @transform_1(%arg0: i32, %arg1: i32) -> (i32, i32) {
    %c0_i32 = arith.constant 0 : i32
    %c0_i32_0 = arith.constant 0 : i32
    return %arg1, %c0_i32 : i32, i32
  }
  func.func @transform_2(%arg0: i32, %arg1: i32) -> (i32, i32) {
    %c0_i32 = arith.constant 0 : i32
    %c0_i32_0 = arith.constant 0 : i32
    %c0_i32_1 = arith.constant 0 : i32
    return %c0_i32, %c0_i32_0 : i32, i32
  }
  func.func @transform_3(%arg0: i32, %arg1: i32) -> (i32, i32) {
    %c0_i32 = arith.constant 0 : i32
    %c0_i32_0 = arith.constant 0 : i32
    return %arg0, %c0_i32 : i32, i32
  }
}

</mosaic_0001>

<bundles_post_ra>
// kernel: tpu_custom_call.1
= control target key start
LH: loop header
LB: loop body
LE: loop exit
PB: predicated region body
PF: predicated region fallthrough
CT: control target
= control target key end

     0   :  { %8 = vsyncpa [#allocation4], 0  ;;  %s452_s0 = inlined_call_operand.hbm [shape: f32[16,128], index: 0, kind: input, shape index: {}]   ;;  %s453_s1 = inlined_call_operand.hbm [shape: f32[128,128], index: 1, kind: input, shape index: {}]   ;;  %s454_s2 = inlined_call_operand.vmem [shape: f32[1,128], index: 2, kind: input, shape index: {}]   ;;  %s455_s3 = inlined_call_operand.hbm [shape: f32[16,128], index: 3, kind: output, shape index: {}]  }
   0x1   :  { %9 = vsyncpa [#allocation7], 0 }
   0x2   :  { %10 = vsyncpa [#allocation5], 0  ;;  %s379_s12 = smov [#allocation3]   ;;  %s307_s16 = scalar_lea.hbm %s452_s0, 256 }
   0x3   :  { %s16_s13 = sshll.u32 %s379_s12, 4  ;;  %p308_p0 = scmp.ne.s32.totalorder %s452_s0, %s307_s16  ;;  %s17_s13 = int_to_ptr.vmem [resolvable:$true] %s16_s13 }
   0x4   :  { %p311_p1 = scmp.lt.u32.totalorder %s307_s16, %s452_s0 }
   0x6   :  { %p313_p2 = pnand %p311_p1, %p308_p0 }
   0x8   :  { %316 = shalt.err (!%p313_p2)
}
   0x9   :  { %s317_s21 = scalar_lea.vmem %s17_s13, 256  ;;  %p322_p4 = scmp.lt.s32.totalorder %s17_s13, %s17_s13 }
   0xa   :  { %p318_p3 = scmp.ne.s32.totalorder %s17_s13, %s317_s21  ;;  %p323_p5 = scmp.lt.s32.totalorder %s317_s21, %s317_s21 }
   0xc   :  { %p324_p6 = por %p323_p5, %p322_p4 }
   0xe   :  { %p325_p7 = pnand %p324_p6, %p318_p3 }
  0x10   :  { %328 = shalt.err (!%p325_p7)
}
  0x11   :  { %s380_s22 = smov 128   ;;  %s381_s23 = smov 8  }
  0x12   :  { %22 = dma.hbm_to_vmem [thread:$0]  %s452_s0, 256, %s17_s13, [#allocation4], %s380_s22, %s380_s22, %s381_s23  }
  0x13   :  { %s382_s26 = smov [#allocation6]   ;;  %s329_s30 = scalar_lea.hbm %s453_s1, 2048 }
  0x14   :  { %s28_s27 = sshll.u32 %s382_s26, 4  ;;  %p330_p8 = scmp.ne.s32.totalorder %s453_s1, %s329_s30  ;;  %s29_s27 = int_to_ptr.vmem [resolvable:$true] %s28_s27 }
  0x15   :  { %p333_p9 = scmp.lt.u32.totalorder %s329_s30, %s453_s1 }
  0x17   :  { %p335_p10 = pnand %p333_p9, %p330_p8 }
  0x19   :  { %338 = shalt.err (!%p335_p10)
}
  0x1a   :  { %s339_s8 = scalar_lea.vmem %s29_s27, 2048  ;;  %p344_p12 = scmp.lt.s32.totalorder %s29_s27, %s29_s27 }
  0x1b   :  { %p340_p11 = scmp.ne.s32.totalorder %s29_s27, %s339_s8  ;;  %p345_p13 = scmp.lt.s32.totalorder %s339_s8, %s339_s8 }
  0x1d   :  { %p346_p0 = por %p345_p13, %p344_p12 }
  0x1f   :  { %p347_p1 = pnand %p346_p0, %p340_p11 }
  0x21   :  { %350 = shalt.err (!%p347_p1)
}
  0x22   :  { %34 = dma.hbm_to_vmem [thread:$0]  %s453_s1, 2048, %s29_s27, [#allocation7], %s380_s22, %s380_s22, %s381_s23  }
  0x23   :  { %373 = dma.done.wait [#allocation4], 256  }
  0x24   :  { %374 = vsyncadd [#allocation4], 4294967040 }
  0x25   :  { %375 = dma.done.wait [#allocation7], 2048  }
  0x26   :  { %376 = vsyncadd [#allocation7], 4294965248  ;;  %v53_v0 = vld [vmem:[#allocation6] sm:$0xff]  ;;  %v54_v1 = vld [vmem:[#allocation6 + $0x8] sm:$0xff] }
  0x27   :  { %v55_v2 = vld [vmem:[#allocation6 + $0x10] sm:$0xff]  ;;  %v262_v3 = vpack.c.bf16 %v54_v1, %v53_v0  ;;  %v56_v4 = vld [vmem:[#allocation6 + $0x18] sm:$0xff]  ;;  %v57_v6 = vld [vmem:[#allocation6 + $0x20] sm:$0xff] }
  0x28   :  { %v266_v5 = vpack.c.bf16 %v56_v4, %v55_v2  ;;  %v58_v7 = vld [vmem:[#allocation6 + $0x28] sm:$0xff]  ;;  %v51_v9 = vld [vmem:[#allocation3] sm:$0xff]  ;;  %v60_v11 = vld [vmem:[#allocation6 + $0x38] sm:$0xff] }
  0x29   :  { %263 = vmatprep.subr.bf16.mxu0 %v262_v3  ;;  %v270_v8 = vpack.c.bf16 %v58_v7, %v57_v6  ;;  %v59_v10 = vld [vmem:[#allocation6 + $0x30] sm:$0xff]  ;;  %259 = vmatprep.mubr.f32.mxu0 %v51_v9  ;;  %v61_v13 = vld [vmem:[#allocation6 + $0x40] sm:$0xff]  ;;  %v62_v14 = vld [vmem:[#allocation6 + $0x48] sm:$0xff] }
  0x2a   :  { %265 = vmatpush3.bf16.msra.mxu0 %v262_v3  ;;  %v274_v12 = vpack.c.bf16 %v60_v11, %v59_v10  ;;  %v278_v15 = vpack.c.bf16 %v62_v14, %v61_v13  ;;  %v63_v16 = vld [vmem:[#allocation6 + $0x50] sm:$0xff]  ;;  %v64_v17 = vld [vmem:[#allocation6 + $0x58] sm:$0xff]  ;;  %v65_v19 = vld [vmem:[#allocation6 + $0x60] sm:$0xff] }
  0x2b   :  { %267 = vmatprep.subr.bf16.mxu0 %v266_v5  ;;  %v282_v18 = vpack.c.bf16 %v64_v17, %v63_v16  ;;  %v66_v20 = vld [vmem:[#allocation6 + $0x68] sm:$0xff]  ;;  %v67_v22 = vld [vmem:[#allocation6 + $0x70] sm:$0xff]  ;;  %v68_v23 = vld [vmem:[#allocation6 + $0x78] sm:$0xff] }
  0x2c   :  { %v286_v21 = vpack.c.bf16 %v66_v20, %v65_v19  ;;  %v290_v24 = vpack.c.bf16 %v68_v23, %v67_v22  ;;  %v52_v25 = vld [vmem:[#allocation3 + $0x8] sm:$0xff]  ;;  %v208_v26 = vld [vmem:[%s454_s2] ss:$0 sm:$0xff]  ;;  %s383_s2 = smov [#allocation8]  }
  0x2d   :  { %s195_s11 = sshll.u32 %s383_s2, 4  ;;  %s196_s11 = int_to_ptr.vmem [resolvable:$true] %s195_s11 }
  0x2e   :  { %269 = vmatpush3.bf16.msra.mxu0 %v266_v5  ;;  %s351_s12 = scalar_lea.vmem %s196_s11, 256  ;;  %p356_p3 = scmp.lt.s32.totalorder %s196_s11, %s196_s11 }
  0x2f   :  { %271 = vmatprep.subr.bf16.mxu0 %v270_v8  ;;  %p352_p2 = scmp.ne.s32.totalorder %s196_s11, %s351_s12  ;;  %p357_p4 = scmp.lt.s32.totalorder %s351_s12, %s351_s12 }
  0x31   :  { %p358_p5 = por %p357_p4, %p356_p3 }
  0x32   :  { %273 = vmatpush3.bf16.msra.mxu0 %v270_v8 }
  0x33   :  { %275 = vmatprep.subr.bf16.mxu0 %v274_v12  ;;  %p359_p6 = pnand %p358_p5, %p352_p2 }
  0x36   :  { %277 = vmatpush3.bf16.msra.mxu0 %v274_v12 }
  0x37   :  { %279 = vmatprep.subr.bf16.mxu0 %v278_v15 }
  0x3a   :  { %281 = vmatpush3.bf16.msra.mxu0 %v278_v15 }
  0x3b   :  { %283 = vmatprep.subr.bf16.mxu0 %v282_v18 }
  0x3e   :  { %285 = vmatpush3.bf16.msra.mxu0 %v282_v18 }
  0x3f   :  { %287 = vmatprep.subr.bf16.mxu0 %v286_v21 }
  0x42   :  { %289 = vmatpush3.bf16.msra.mxu0 %v286_v21 }
  0x43   :  { %291 = vmatprep.subr.bf16.mxu0 %v290_v24 }
  0x46   :  { %293 = vmatpush3.bf16.msra.mxu0 %v290_v24 }
  0x49   :  { %260 = vmatmul.mubr.f32.vlgmr.msra.gmra.mrb[0].mxu0 %v52_v25 }
 0x11c   :  { %v261_v27 = vpop.f32.mrb[0].mxu0 }
 0x11d   :  { %v135_v28 = vpop.f32.mrb[1].mxu0  ;;  %v161_v30 = vadd.f32 %v261_v27, %v208_v26 }
 0x11e   :  { %v160_v29 = vadd.f32 %v208_v26, %v135_v28 }
 0x11f   :  { %v163_v32 = vmul.f32 %v161_v30, %v161_v30 }
 0x120   :  { %v162_v31 = vmul.f32 %v160_v29, %v160_v29 }
 0x122   :  { %164 = vadd.xlane.f32.xlu0 %v162_v31 }
 0x126   :  { %166 = vadd.xlane.f32.xlu0 %v163_v32 }
 0x1af   :  { %v165_v33 = vpop.xlane.xlu0 %164 }
 0x1b0   :  { %299 = vrsqrt.f32 %v165_v33  ;;  %vm170_vm0 = vcmp.eq.f32.partialorder %v165_v33, inf  ;;  %v173_v37 = vand.u32 2147483648, %v165_v33  ;;  %vm172_vm1 = vcmp.eq.f32.partialorder %v165_v33, 0.0 }
 0x1b3   :  { %v167_v34 = vpop.xlane.xlu0 %166 }
 0x1b4   :  { %301 = vrsqrt.f32 %v167_v34  ;;  %vm177_vm2 = vcmp.eq.f32.partialorder %v167_v34, inf  ;;  %v180_v43 = vand.u32 2147483648, %v167_v34  ;;  %vm179_vm3 = vcmp.eq.f32.partialorder %v167_v34, 0.0 }
 0x1ba   :  { %v300_v35 = vpop.eup %299 }
 0x1bb   :  { %v169_v36 = vmul.f32 %v300_v35, %v165_v33 }
 0x1bd   :  { %v171_v38 = vsel %vm170_vm0, %v165_v33, %v169_v36 }
 0x1be   :  { %v302_v39 = vpop.eup %301  ;;  %v174_v40 = vsel %vm172_vm1, %v173_v37, %v171_v38 }
 0x1bf   :  { %v182_v41 = vadd.f32 1e-08, %v174_v40  ;;  %v176_v42 = vmul.f32 %v302_v39, %v167_v34 }
 0x1c1   :  { %303 = vrcp.f32 %v182_v41  ;;  %v178_v44 = vsel %vm177_vm2, %v167_v34, %v176_v42 }
 0x1c2   :  { %v181_v45 = vsel %vm179_vm3, %v180_v43, %v178_v44 }
 0x1c3   :  { %v183_v46 = vadd.f32 1e-08, %v181_v45 }
 0x1c5   :  { %305 = vrcp.f32 %v183_v46 }
 0x1cb   :  { %v304_v47 = vpop.eup %303 }
 0x1cc   :  { %v185_v48 = vmul.f32 %v304_v47, %v160_v29 }
 0x1ce   :  { %188 = vst [vmem:[#allocation8] sm:$0xff] %v185_v48 }
 0x1cf   :  { %v306_v49 = vpop.eup %305 }
 0x1d0   :  { %v187_v50 = vmul.f32 %v306_v49, %v161_v30 }
 0x1d2   :  { %189 = vst [vmem:[#allocation8 + $0x8] sm:$0xff] %v187_v50 }
 0x1d3   :  { %362 = shalt.err (!%p359_p6)
}
 0x1d4   :  { %s363_s15 = scalar_lea.hbm %s455_s3, 256 }
 0x1d5   :  { %p364_p7 = scmp.ne.s32.totalorder %s455_s3, %s363_s15  ;;  %p367_p8 = scmp.lt.u32.totalorder %s363_s15, %s455_s3 }
 0x1d7   :  { %p369_p9 = pnand %p367_p8, %p364_p7 }
 0x1d9   :  { %372 = shalt.err (!%p369_p9)
}
 0x1da   :  { %201 = dma.vmem_to_hbm [thread:$0]  %s196_s11, 256, %s455_s3, [#allocation5], %s380_s22, %s380_s22, %s381_s23  }
 0x1db   :  { %377 = dma.done.wait [#allocation5], 256  }
 0x1dc   :  { %378 = vsyncadd [#allocation5], 4294967040 }
 0x1dd   :  { %205 = vsyncpa [#allocation4], 1 }
 0x1de   :  { %206 = vsyncpa [#allocation7], 1 }
 0x1df   :  { %207 = vsyncpa [#allocation5], 1 }

</bundles_post_ra>
